<compile_context>
chip_gen: v7x
topology: tpu7x:2x2x1
jax: 0.10.0
libtpu: 0.0.40
codegen_flags: <defaults>
</compile_context>

<pallas_src>
import functools

import jax
import jax.numpy as jnp
from jax.experimental import pallas as pl
from jax.experimental.pallas import tpu as pltpu


# ---------------------------------------------------------------------------
# Kernel
# ---------------------------------------------------------------------------
def _sge_output_kernel(*refs, eps, packed, precision):
    if packed:
        (hs_ref, res_ref, w_ref, b_ref, gamma_ref, beta_ref, mproj_ref,
         o_ref) = refs
    else:
        hs_ref, res_ref, w_ref, b_ref, gamma_ref, beta_ref, o_ref = refs
        mproj_ref = None

    # dense: x = hs @ w (+ bias). MXU, f32 accumulate.
    x = jnp.dot(hs_ref[...], w_ref[...],
                preferred_element_type=jnp.float32, precision=precision)
    # Dropout: inference mode -> identity.
    # TODO(synk): training-mode dropout (pltpu.prng_random_bits mask) not wired.
    x = x + b_ref[...].astype(jnp.float32) + res_ref[...].astype(jnp.float32)

    if packed:
        # Lane-packed layout: each VMEM row holds P logical rows of width H
        # (P*H == 128).  Per-logical-row mean/var via a block-averaging matmul
        # (mproj has 1/H on each HxH diagonal block) -> every op stays
        # lane-dense; no masked stores, no 3/4-wasted XLU reductions.
        mproj = mproj_ref[...]
        mean = jnp.dot(x, mproj, preferred_element_type=jnp.float32,
                       precision=precision)
        xc = x - mean
        var = jnp.dot(xc * xc, mproj, preferred_element_type=jnp.float32,
                      precision=precision)
    else:
        mean = jnp.mean(x, axis=-1, keepdims=True)
        xc = x - mean
        var = jnp.mean(xc * xc, axis=-1, keepdims=True)

    y = xc * jax.lax.rsqrt(var + eps)
    y = y * gamma_ref[...].astype(jnp.float32) + beta_ref[...].astype(jnp.float32)
    o_ref[...] = y.astype(o_ref.dtype)


# ---------------------------------------------------------------------------
# Tiling helpers
# ---------------------------------------------------------------------------
def _round_up(x, m):
    return ((x + m - 1) // m) * m


def _vmem_limit_bytes():
    """Generation-aware VMEM limit (conservative on 64-MiB v7x TensorCores)."""
    phys = 64 << 20
    try:
        info = pltpu.get_tpu_info()
        phys = int(getattr(info, "vmem_capacity_bytes", phys)) or phys
    except Exception:
        pass
    if phys <= (64 << 20):                  # v7x-class: 64 MiB per TensorCore
        return (phys * 9) // 16             # ~36 MiB -> headroom for Mosaic scratch
    return min(100 << 20, (phys * 3) // 4)  # v5e / v6e: 128 MiB physical


def _pick_tile_rows(n_rows, row_bytes, budget, *, max_tile, min_steps=4,
                    sublane=8):
    """Largest row tile (multiple of `sublane`) whose per-tile working set fits
    `budget`, while keeping >= min_steps grid steps when the problem is big
    enough (pipelining + v7x dual-TensorCore sharding)."""
    if n_rows <= sublane:
        return n_rows                       # whole (tiny) array as one block
    cap_steps = max(sublane, _round_up(pl.cdiv(n_rows, min_steps), sublane))
    tile = min(max_tile, cap_steps, (n_rows // sublane) * sublane)
    tile = max(sublane, (tile // sublane) * sublane)
    while tile > sublane and tile * row_bytes > budget:
        tile -= sublane
    return tile


# ---------------------------------------------------------------------------
# Wrapper
# ---------------------------------------------------------------------------
def protein_sge_output(hidden_states, input_tensor, w, b, gamma, beta,
                       *, eps=1e-12, tile_rows=None, precision=None):
    """Fused dense -> dropout(identity, eval) -> +residual -> LayerNorm.

    hidden_states: [B, S, I]     (dense input)
    input_tensor:  [B, S, H]     (residual)
    w:             [I, H]        (== PyTorch nn.Linear(I, H).weight.T)
    b, gamma, beta:[H]
    precision: pass jax.lax.Precision.HIGHEST for strict f32 parity with a
      PyTorch f32 Linear (default backend matmul precision otherwise).
    """
    B, S, I = hidden_states.shape
    H = input_tensor.shape[-1]
    M = B * S
    assert w.shape == (I, H), (
        f"w must be (intermediate={I}, hidden={H}) = nn.Linear.weight.T; "
        f"got {w.shape}")
    assert b.shape == (H,) and gamma.shape == (H,) and beta.shape == (H,)

    in_dt = hidden_states.dtype
    out_dt = in_dt
    itemsize = jnp.dtype(in_dt).itemsize
    vmem_limit = _vmem_limit_bytes()

    # Lane packing: P logical rows per 128-lane row when H < 128.
    P = 1
    if H < 128 and (128 % H == 0) and (M % (128 // H) == 0):
        P = 128 // H

    if P > 1:
        Mp = M // P
        hs2 = hidden_states.reshape(Mp, P * I)          # free (row-major view)
        res2 = input_tensor.reshape(Mp, P * H)          # free (row-major view)
        eye = jnp.eye(P, dtype=w.dtype)
        w_k = jnp.kron(eye, w)                          # (P*I, P*H) block-diag
        mproj = jnp.kron(jnp.eye(P, dtype=jnp.float32),
                         jnp.full((H, H), 1.0 / H, jnp.float32))   # (P*H, P*H)
        b2 = jnp.tile(b, P).reshape(1, P * H)
        g2 = jnp.tile(gamma, P).reshape(1, P * H)
        bt2 = jnp.tile(beta, P).reshape(1, P * H)
    else:
        Mp = M
        hs2 = hidden_states.reshape(M, I)
        res2 = input_tensor.reshape(M, H)
        w_k = w
        mproj = None
        b2 = b.reshape(1, H)
        g2 = gamma.reshape(1, H)
        bt2 = beta.reshape(1, H)

    in_cols = hs2.shape[1]
    out_cols = res2.shape[1]

    # Grid-invariant params stay VMEM-resident (constant index_map => fetched
    # once); budget them double-buffered (default pipeline allocation).
    param_bytes = 2 * (w_k.size * jnp.dtype(w_k.dtype).itemsize
                       + 3 * out_cols * itemsize
                       + (mproj.size * 4 if mproj is not None else 0))
    if param_bytes > (vmem_limit * 3) // 10:
        # TODO(synk): add a K-tiled (grid over I) path with an f32 accumulator
        # scratch for configs whose full (I, H) weight cannot stay resident.
        raise ValueError(
            f"dense weight working set ({param_bytes / 2**20:.1f} MiB) too "
            f"large to stay VMEM-resident (limit {vmem_limit / 2**20:.0f} MiB)")

    if tile_rows is None:
        # Bytes that scale with the row tile: double-buffered hs/res/out DMA
        # slabs plus ~5 f32 temporaries of width out_cols.
        row_bytes = (2 * (in_cols + out_cols) * itemsize
                     + 2 * out_cols * jnp.dtype(out_dt).itemsize
                     + 5 * out_cols * 4)
        max_tile = 1024 if (P > 1 or out_cols >= 128) else 256
        budget = max(vmem_limit - param_bytes - (2 << 20), 1 << 20)
        tile_rows = _pick_tile_rows(Mp, row_bytes, budget, max_tile=max_tile)

    grid = (pl.cdiv(Mp, tile_rows),)   # partial last block handled by Pallas

    kernel = functools.partial(_sge_output_kernel, eps=eps, packed=(P > 1),
                               precision=precision)

    in_specs = [
        pl.BlockSpec((tile_rows, in_cols), lambda i: (i, 0)),    # hidden_states
        pl.BlockSpec((tile_rows, out_cols), lambda i: (i, 0)),   # residual
        pl.BlockSpec(w_k.shape, lambda i: (0, 0)),               # dense weight
        pl.BlockSpec((1, out_cols), lambda i: (0, 0)),           # dense bias
        pl.BlockSpec((1, out_cols), lambda i: (0, 0)),           # LN gamma
        pl.BlockSpec((1, out_cols), lambda i: (0, 0)),           # LN beta
    ]
    args = [hs2, res2, w_k, b2, g2, bt2]
    if P > 1:
        in_specs.append(pl.BlockSpec(mproj.shape, lambda i: (0, 0)))  # LN mproj
        args.append(mproj)

    out2 = pl.pallas_call(
        kernel,
        out_shape=jax.ShapeDtypeStruct((Mp, out_cols), out_dt),
        grid_spec=pltpu.PrefetchScalarGridSpec(
            num_scalar_prefetch=0,
            grid=grid,
            in_specs=in_specs,
            out_specs=pl.BlockSpec((tile_rows, out_cols), lambda i: (i, 0)),
        ),
        compiler_params=pltpu.CompilerParams(
            dimension_semantics=("parallel",),
            vmem_limit_bytes=vmem_limit,
        ),
    )(*args)

    return out2.reshape(B, S, H)


# ---------------------------------------------------------------------------
# Self-test
# ---------------------------------------------------------------------------
if __name__ == "__main__":
    # Small config: intermediate_size=64, hidden_size=32, layer_norm_eps=1e-12
    B, S, I, H = 2, 8, 64, 32
    eps = 1e-12

    key = jax.random.PRNGKey(0)
    k_hs, k_res, k_w, k_b, k_g, k_bt = jax.random.split(key, 6)

    hidden_states = jax.random.normal(k_hs, (B, S, I), dtype=jnp.float32)
    input_tensor = jax.random.normal(k_res, (B, S, H), dtype=jnp.float32)

    # Parameters per nn.Linear(I, H) and LayerNorm(H); weight stored as (I, H)
    # == PyTorch nn.Linear.weight.T so the kernel computes x @ w directly.
    w = jax.random.normal(k_w, (I, H), dtype=jnp.float32) * (1.0 / jnp.sqrt(I))
    b = jax.random.normal(k_b, (H,), dtype=jnp.float32) * 0.01
    gamma = jnp.ones((H,), dtype=jnp.float32) + 0.1 * jax.random.normal(
        k_g, (H,), dtype=jnp.float32)
    beta = 0.1 * jax.random.normal(k_bt, (H,), dtype=jnp.float32)

    out = protein_sge_output(hidden_states, input_tensor, w, b, gamma, beta,
                             eps=eps)
    out = jax.block_until_ready(out)

    # Pure-JAX reference check (same default matmul precision as the kernel).
    x_ref = hidden_states.reshape(-1, I) @ w + b + input_tensor.reshape(-1, H)
    mean = x_ref.mean(-1, keepdims=True)
    var = ((x_ref - mean) ** 2).mean(-1, keepdims=True)
    ref = ((x_ref - mean) * jax.lax.rsqrt(var + eps)) * gamma + beta
    ref = ref.reshape(B, S, H)
    err = float(jnp.max(jnp.abs(out - ref)))
    assert jnp.allclose(out, ref, atol=1e-4, rtol=1e-4), f"mismatch: {err}"

    print("KERNEL_OK")
</pallas_src>

<mosaic_0001>
module attributes {stable_mosaic.version = 11 : i64} {
  func.func @_sge_output_kernel(%arg0: i32, %arg1: memref<4x256xf32, #tpu.memory_space<vmem>>, %arg2: memref<4x128xf32, #tpu.memory_space<vmem>>, %arg3: memref<256x128xf32, #tpu.memory_space<vmem>>, %arg4: memref<1x128xf32, #tpu.memory_space<vmem>>, %arg5: memref<1x128xf32, #tpu.memory_space<vmem>>, %arg6: memref<1x128xf32, #tpu.memory_space<vmem>>, %arg7: memref<128x128xf32, #tpu.memory_space<vmem>>, %arg8: memref<4x128xf32, #tpu.memory_space<vmem>>) attributes {dimension_semantics = [#tpu.dimension_semantics<parallel>], iteration_bounds = array<i64: 1>, scalar_prefetch = 0 : i64, scratch_operands = 0 : i64, tpu.core_type = #tpu.core_type<tc>, window_params = [{transform_indices = @transform_0, window_bounds = array<i64: 4, 256>}, {transform_indices = @transform_1, window_bounds = array<i64: 4, 128>}, {pipeline_mode = #tpu.pipeline_mode<synchronous>, transform_indices = @transform_2, window_bounds = array<i64: 256, 128>}, {pipeline_mode = #tpu.pipeline_mode<synchronous>, transform_indices = @transform_3, window_bounds = array<i64: 1, 128>}, {pipeline_mode = #tpu.pipeline_mode<synchronous>, transform_indices = @transform_4, window_bounds = array<i64: 1, 128>}, {pipeline_mode = #tpu.pipeline_mode<synchronous>, transform_indices = @transform_5, window_bounds = array<i64: 1, 128>}, {pipeline_mode = #tpu.pipeline_mode<synchronous>, transform_indices = @transform_6, window_bounds = array<i64: 128, 128>}, {transform_indices = @transform_7, window_bounds = array<i64: 4, 128>}]} {
    %c0 = arith.constant 0 : index
    %c0_0 = arith.constant 0 : index
    %0 = vector.load %arg1[%c0, %c0_0] : memref<4x256xf32, #tpu.memory_space<vmem>>, vector<4x256xf32>
    %c0_1 = arith.constant 0 : index
    %c0_2 = arith.constant 0 : index
    %1 = vector.load %arg3[%c0_1, %c0_2] : memref<256x128xf32, #tpu.memory_space<vmem>>, vector<256x128xf32>
    %cst = arith.constant dense<0.000000e+00> : vector<4x128xf32>
    %2 = tpu.matmul %0, %1, %cst {dimension_numbers = #tpu.dot_dimension_numbers<[1], [0], [0], [1], [0, 0, 1, 1], [], []>} : vector<4x256xf32>, vector<256x128xf32>, vector<4x128xf32> -> vector<4x128xf32>
    %c0_3 = arith.constant 0 : index
    %c0_4 = arith.constant 0 : index
    %3 = vector.load %arg4[%c0_3, %c0_4] : memref<1x128xf32, #tpu.memory_space<vmem>>, vector<1x128xf32>
    %4 = vector.broadcast %3 : vector<1x128xf32> to vector<4x128xf32>
    %5 = arith.addf %2, %4 : vector<4x128xf32>
    %c0_5 = arith.constant 0 : index
    %c0_6 = arith.constant 0 : index
    %6 = vector.load %arg2[%c0_5, %c0_6] : memref<4x128xf32, #tpu.memory_space<vmem>>, vector<4x128xf32>
    %7 = arith.addf %5, %6 : vector<4x128xf32>
    %c0_7 = arith.constant 0 : index
    %c0_8 = arith.constant 0 : index
    %8 = vector.load %arg7[%c0_7, %c0_8] : memref<128x128xf32, #tpu.memory_space<vmem>>, vector<128x128xf32>
    %cst_9 = arith.constant dense<0.000000e+00> : vector<4x128xf32>
    %9 = tpu.matmul %7, %8, %cst_9 {dimension_numbers = #tpu.dot_dimension_numbers<[1], [0], [0], [1], [0, 0, 1, 1], [], []>} : vector<4x128xf32>, vector<128x128xf32>, vector<4x128xf32> -> vector<4x128xf32>
    %10 = arith.subf %7, %9 : vector<4x128xf32>
    %11 = arith.mulf %10, %10 : vector<4x128xf32>
    %cst_10 = arith.constant dense<0.000000e+00> : vector<4x128xf32>
    %12 = tpu.matmul %11, %8, %cst_10 {dimension_numbers = #tpu.dot_dimension_numbers<[1], [0], [0], [1], [0, 0, 1, 1], [], []>} : vector<4x128xf32>, vector<128x128xf32>, vector<4x128xf32> -> vector<4x128xf32>
    %cst_11 = arith.constant 9.99999996E-13 : f32
    %13 = vector.broadcast %cst_11 : f32 to vector<4x128xf32>
    %14 = arith.addf %12, %13 : vector<4x128xf32>
    %15 = math.rsqrt %14 : vector<4x128xf32>
    %16 = arith.mulf %10, %15 : vector<4x128xf32>
    %c0_12 = arith.constant 0 : index
    %c0_13 = arith.constant 0 : index
    %17 = vector.load %arg5[%c0_12, %c0_13] : memref<1x128xf32, #tpu.memory_space<vmem>>, vector<1x128xf32>
    %18 = vector.broadcast %17 : vector<1x128xf32> to vector<4x128xf32>
    %19 = arith.mulf %16, %18 : vector<4x128xf32>
    %c0_14 = arith.constant 0 : index
    %c0_15 = arith.constant 0 : index
    %20 = vector.load %arg6[%c0_14, %c0_15] : memref<1x128xf32, #tpu.memory_space<vmem>>, vector<1x128xf32>
    %21 = vector.broadcast %20 : vector<1x128xf32> to vector<4x128xf32>
    %22 = arith.addf %19, %21 : vector<4x128xf32>
    %c0_16 = arith.constant 0 : index
    %c0_17 = arith.constant 0 : index
    %23 = vector.load %arg8[%c0_16, %c0_17] : memref<4x128xf32, #tpu.memory_space<vmem>>, vector<4x128xf32>
    tpu.vector_store %arg8[%c0_16, %c0_17], %22 {strides = array<i32>} : memref<4x128xf32, #tpu.memory_space<vmem>>, vector<4x128xf32>,
    return
  }
  func.func @transform_0(%arg0: i32) -> (i32, i32) {
    %c0_i32 = arith.constant 0 : i32
    %c0_i32_0 = arith.constant 0 : i32
    return %arg0, %c0_i32 : i32, i32
  }
  func.func @transform_1(%arg0: i32) -> (i32, i32) {
    %c0_i32 = arith.constant 0 : i32
    %c0_i32_0 = arith.constant 0 : i32
    return %arg0, %c0_i32 : i32, i32
  }
  func.func @transform_2(%arg0: i32) -> (i32, i32) {
    %c0_i32 = arith.constant 0 : i32
    %c0_i32_0 = arith.constant 0 : i32
    %c0_i32_1 = arith.constant 0 : i32
    return %c0_i32, %c0_i32_0 : i32, i32
  }
  func.func @transform_3(%arg0: i32) -> (i32, i32) {
    %c0_i32 = arith.constant 0 : i32
    %c0_i32_0 = arith.constant 0 : i32
    %c0_i32_1 = arith.constant 0 : i32
    return %c0_i32, %c0_i32_0 : i32, i32
  }
  func.func @transform_4(%arg0: i32) -> (i32, i32) {
    %c0_i32 = arith.constant 0 : i32
    %c0_i32_0 = arith.constant 0 : i32
    %c0_i32_1 = arith.constant 0 : i32
    return %c0_i32, %c0_i32_0 : i32, i32
  }
  func.func @transform_5(%arg0: i32) -> (i32, i32) {
    %c0_i32 = arith.constant 0 : i32
    %c0_i32_0 = arith.constant 0 : i32
    %c0_i32_1 = arith.constant 0 : i32
    return %c0_i32, %c0_i32_0 : i32, i32
  }
  func.func @transform_6(%arg0: i32) -> (i32, i32) {
    %c0_i32 = arith.constant 0 : i32
    %c0_i32_0 = arith.constant 0 : i32
    %c0_i32_1 = arith.constant 0 : i32
    return %c0_i32, %c0_i32_0 : i32, i32
  }
  func.func @transform_7(%arg0: i32) -> (i32, i32) {
    %c0_i32 = arith.constant 0 : i32
    %c0_i32_0 = arith.constant 0 : i32
    return %arg0, %c0_i32 : i32, i32
  }
}

</mosaic_0001>

<bundles_post_ra>
// kernel: tpu_custom_call.1
= control target key start
LH: loop header
LB: loop body
LE: loop exit
PB: predicated region body
PF: predicated region fallthrough
CT: control target
= control target key end

     0   :  { %12 = vsyncpa [#allocation3], 0  ;;  %s880_s0 = inlined_call_operand.hbm [shape: f32[4,256], index: 0, kind: input, shape index: {}]   ;;  %s881_s1 = inlined_call_operand.hbm [shape: f32[4,128], index: 1, kind: input, shape index: {}]   ;;  %s882_s2 = inlined_call_operand.hbm [shape: f32[256,128], index: 2, kind: input, shape index: {}]   ;;  %s883_s3 = inlined_call_operand.vmem [shape: f32[1,128], index: 3, kind: input, shape index: {}]   ;;  %s884_s4 = inlined_call_operand.vmem [shape: f32[1,128], index: 4, kind: input, shape index: {}]   ;;  %s885_s5 = inlined_call_operand.vmem [shape: f32[1,128], index: 5, kind: input, shape index: {}]   ;;  %s886_s6 = inlined_call_operand.hbm [shape: f32[128,128], index: 6, kind: input, shape index: {}]   ;;  %s887_s7 = inlined_call_operand.hbm [shape: f32[4,128], index: 7, kind: output, shape index: {}]  }
   0x1   :  { %13 = vsyncpa [#allocation6], 0 }
   0x2   :  { %14 = vsyncpa [#allocation9], 0 }
   0x3   :  { %15 = vsyncpa [#allocation4], 0  ;;  %s740_s24 = smov [#allocation5]   ;;  %s741_s26 = smov [#allocation2]  }
   0x4   :  { %s32_s25 = sshll.u32 %s740_s24, 4  ;;  %s22_s27 = sshll.u32 %s741_s26, 4  ;;  %s33_s25 = int_to_ptr.vmem [resolvable:$true] %s32_s25  ;;  %s23_s27 = int_to_ptr.vmem [resolvable:$true] %s22_s27 }
   0x5   :  { %s622_s30 = scalar_lea.hbm %s881_s1, 64 }
   0x6   :  { %p623_p0 = scmp.ne.s32.totalorder %s881_s1, %s622_s30  ;;  %p626_p1 = scmp.lt.u32.totalorder %s622_s30, %s881_s1 }
   0x8   :  { %p628_p2 = pnand %p626_p1, %p623_p0 }
   0xa   :  { %631 = shalt.err (!%p628_p2)
}
   0xb   :  { %s632_s12 = scalar_lea.vmem %s33_s25, 64  ;;  %p637_p4 = scmp.lt.s32.totalorder %s33_s25, %s33_s25 }
   0xc   :  { %p633_p3 = scmp.ne.s32.totalorder %s33_s25, %s632_s12  ;;  %p638_p5 = scmp.lt.s32.totalorder %s632_s12, %s632_s12 }
   0xe   :  { %p639_p6 = por %p638_p5, %p637_p4 }
  0x10   :  { %p640_p7 = pnand %p639_p6, %p633_p3 }
  0x12   :  { %643 = shalt.err (!%p640_p7)
}
  0x13   :  { %35 = dma.hbm_to_vmem [thread:$0]  %s881_s1, 64, %s33_s25, [#allocation6]  }
  0x14   :  { %s644_s17 = scalar_lea.hbm %s880_s0, 128 }
  0x15   :  { %p645_p8 = scmp.ne.s32.totalorder %s880_s0, %s644_s17  ;;  %p648_p9 = scmp.lt.u32.totalorder %s644_s17, %s880_s0 }
  0x17   :  { %p650_p10 = pnand %p648_p9, %p645_p8 }
  0x19   :  { %653 = shalt.err (!%p650_p10)
}
  0x1a   :  { %s654_s22 = scalar_lea.vmem %s23_s27, 128  ;;  %p659_p12 = scmp.lt.s32.totalorder %s23_s27, %s23_s27 }
  0x1b   :  { %p655_p11 = scmp.ne.s32.totalorder %s23_s27, %s654_s22  ;;  %p660_p13 = scmp.lt.s32.totalorder %s654_s22, %s654_s22 }
  0x1d   :  { %p661_p0 = por %p660_p13, %p659_p12 }
  0x1f   :  { %p662_p1 = pnand %p661_p0, %p655_p11 }
  0x21   :  { %665 = shalt.err (!%p662_p1)
}
  0x22   :  { %25 = dma.hbm_to_vmem [thread:$0]  %s880_s0, 128, %s23_s27, [#allocation3]  }
  0x23   :  { %s742_s24 = smov [#allocation7]   ;;  %s666_s29 = scalar_lea.hbm %s882_s2, 4096 }
  0x24   :  { %s41_s25 = sshll.u32 %s742_s24, 4  ;;  %p667_p2 = scmp.ne.s32.totalorder %s882_s2, %s666_s29  ;;  %s42_s25 = int_to_ptr.vmem [resolvable:$true] %s41_s25 }
  0x25   :  { %p670_p3 = scmp.lt.u32.totalorder %s666_s29, %s882_s2 }
  0x27   :  { %p672_p4 = pnand %p670_p3, %p667_p2 }
  0x29   :  { %675 = shalt.err (!%p672_p4)
}
  0x2a   :  { %s676_s11 = scalar_lea.vmem %s42_s25, 4096  ;;  %p681_p6 = scmp.lt.s32.totalorder %s42_s25, %s42_s25 }
  0x2b   :  { %p677_p5 = scmp.ne.s32.totalorder %s42_s25, %s676_s11  ;;  %p682_p7 = scmp.lt.s32.totalorder %s676_s11, %s676_s11 }
  0x2d   :  { %p683_p8 = por %p682_p7, %p681_p6 }
  0x2f   :  { %p684_p9 = pnand %p683_p8, %p677_p5 }
  0x31   :  { %687 = shalt.err (!%p684_p9)
}
  0x32   :  { %s743_s0 = smov 128   ;;  %s744_s27 = smov 8  }
  0x33   :  { %47 = dma.hbm_to_vmem [thread:$0]  %s882_s2, 4096, %s42_s25, [#allocation6], %s743_s0, %s743_s0, %s744_s27  }
  0x34   :  { %s745_s14 = smov [#allocation8]   ;;  %s688_s18 = scalar_lea.hbm %s886_s6, 2048 }
  0x35   :  { %s59_s15 = sshll.u32 %s745_s14, 4  ;;  %p689_p10 = scmp.ne.s32.totalorder %s886_s6, %s688_s18  ;;  %s60_s15 = int_to_ptr.vmem [resolvable:$true] %s59_s15 }
  0x36   :  { %p692_p11 = scmp.lt.u32.totalorder %s688_s18, %s886_s6 }
  0x38   :  { %p694_p12 = pnand %p692_p11, %p689_p10 }
  0x3a   :  { %697 = shalt.err (!%p694_p12)
}
  0x3b   :  { %s698_s1 = scalar_lea.vmem %s60_s15, 2048  ;;  %p703_p0 = scmp.lt.s32.totalorder %s60_s15, %s60_s15 }
  0x3c   :  { %p699_p13 = scmp.ne.s32.totalorder %s60_s15, %s698_s1  ;;  %p704_p1 = scmp.lt.s32.totalorder %s698_s1, %s698_s1 }
  0x3e   :  { %p705_p2 = por %p704_p1, %p703_p0 }
  0x40   :  { %p706_p3 = pnand %p705_p2, %p699_p13 }
  0x42   :  { %709 = shalt.err (!%p706_p3)
}
  0x43   :  { %65 = dma.hbm_to_vmem [thread:$0]  %s886_s6, 2048, %s60_s15, [#allocation9], %s743_s0, %s743_s0, %s744_s27  }
  0x44   :  { %732 = dma.done.wait [#allocation3], 128  }
  0x45   :  { %733 = vsyncadd [#allocation3], 4294967168 }
  0x46   :  { %734 = dma.done.wait [#allocation6], 4160  }
  0x47   :  { %735 = vsyncadd [#allocation6], 4294963136 }
  0x48   :  { %736 = dma.done.wait [#allocation9], 2048  }
  0x49   :  { %737 = vsyncadd [#allocation9], 4294965248  ;;  %v746_v0 = vmov 0.0|0.0   ;;  %v95_v1 = vld [vmem:[#allocation7 + $0x80] sm:$0xff]  ;;  %v96_v2 = vld [vmem:[#allocation7 + $0x88] sm:$0xff]  ;;  %vm747_vm0 = vmmov 0  }
  0x4a   :  { %561 = vmatprep.subr.bf16.mxu1 %v746_v0  ;;  %v79_v3 = vld [vmem:[#allocation7] sm:$0xff]  ;;  %v529_v4 = vpack.c.bf16 %v96_v2, %v95_v1  ;;  %v80_v5 = vld [vmem:[#allocation7 + $0x8] sm:$0xff]  ;;  %v97_v6 = vld [vmem:[#allocation7 + $0x90] sm:$0xff]  ;;  %s749_s29 = smov [#allocation10]  }
  0x4b   :  { %v98_v7 = vld [vmem:[#allocation7 + $0x98] sm:$0xff]  ;;  %v531_v8 = vpack.c.bf16 %v80_v5, %v79_v3  ;;  %v81_v10 = vld [vmem:[#allocation7 + $0x10] sm:$0xff]  ;;  %v99_v12 = vld [vmem:[#allocation7 + $0xa0] sm:$0xff]  ;;  %s376_s30 = sshll.u32 %s749_s29, 4  ;;  %s377_s30 = int_to_ptr.vmem [resolvable:$true] %s376_s30 }
  0x4c   :  { %v533_v9 = vpack.c.bf16 %v98_v7, %v97_v6  ;;  %v82_v11 = vld [vmem:[#allocation7 + $0x18] sm:$0xff]  ;;  %530 = vmatprep.subr.bf16.mxu0 %v529_v4  ;;  %v100_v13 = vld [vmem:[#allocation7 + $0xa8] sm:$0xff]  ;;  %v83_v16 = vld [vmem:[#allocation7 + $0x20] sm:$0xff]  ;;  %s710_s8 = scalar_lea.vmem %s377_s30, 64  ;;  %p715_p5 = scmp.lt.s32.totalorder %s377_s30, %s377_s30 }
  0x4d   :  { %532 = vmatpush3.bf16.msra.mxu0 %v531_v8  ;;  %v535_v14 = vpack.c.bf16 %v82_v11, %v81_v10  ;;  %v537_v15 = vpack.c.bf16 %v100_v13, %v99_v12  ;;  %v84_v17 = vld [vmem:[#allocation7 + $0x28] sm:$0xff]  ;;  %v101_v18 = vld [vmem:[#allocation7 + $0xb0] sm:$0xff]  ;;  %v102_v19 = vld [vmem:[#allocation7 + $0xb8] sm:$0xff]  ;;  %v748_v12 = vmov 0.0   ;;  %p711_p4 = scmp.ne.s32.totalorder %s377_s30, %s710_s8  ;;  %p716_p6 = scmp.lt.s32.totalorder %s710_s8, %s710_s8 }
  0x4e   :  { %534 = vmatprep.subr.bf16.mxu0 %v533_v9  ;;  %v539_v20 = vpack.c.bf16 %v84_v17, %v83_v16  ;;  %v541_v21 = vpack.c.bf16 %v102_v19, %v101_v18  ;;  %v85_v22 = vld [vmem:[#allocation7 + $0x30] sm:$0xff]  ;;  %v86_v23 = vld [vmem:[#allocation7 + $0x38] sm:$0xff]  ;;  %v103_v24 = vld [vmem:[#allocation7 + $0xc0] sm:$0xff]  ;;  %491 = vmatprep.mubr.msk.f32.mxu1 %vm747_vm0, %v748_v12 }
  0x4f   :  { %v104_v25 = vld [vmem:[#allocation7 + $0xc8] sm:$0xff]  ;;  %v839_v26 = vld [vmem:[#allocation2] sm:$0xff]  ;;  %v193_v28 = vld [vmem:[#allocation8] sm:$0xff]  ;;  %v543_v31 = vpack.c.bf16 %v86_v23, %v85_v22  ;;  %p717_p7 = por %p716_p6, %p715_p5 }
  0x50   :  { %v119_v27 = vcombine.high %v839_v26, %v839_v26  ;;  %v194_v29 = vld [vmem:[#allocation8 + $0x8] sm:$0xff]  ;;  %v195_v30 = vld [vmem:[#allocation8 + $0x10] sm:$0xff]  ;;  %v196_v33 = vld [vmem:[#allocation8 + $0x18] sm:$0xff]  ;;  %v545_v34 = vpack.c.bf16 %v104_v25, %v103_v24 }
  0x51   :  { %536 = vmatpush3.bf16.msra.mxu0 %v535_v14  ;;  %v562_v32 = vpack.c.bf16 %v194_v29, %v193_v28  ;;  %v87_v35 = vld [vmem:[#allocation7 + $0x40] sm:$0xff]  ;;  %v88_v36 = vld [vmem:[#allocation7 + $0x48] sm:$0xff]  ;;  %v105_v37 = vld [vmem:[#allocation7 + $0xd0] sm:$0xff]  ;;  %v565_v39 = vpack.c.bf16 %v196_v33, %v195_v30  ;;  %p718_p8 = pnand %p717_p7, %p711_p4 }
  0x52   :  { %538 = vmatprep.subr.bf16.mxu0 %v537_v15  ;;  %185 = vmatprep.mubr.f32.mxu0 %v119_v27  ;;  %v106_v38 = vld [vmem:[#allocation7 + $0xd8] sm:$0xff]  ;;  %v197_v40 = vld [vmem:[#allocation8 + $0x20] sm:$0xff]  ;;  %v198_v41 = vld [vmem:[#allocation8 + $0x28] sm:$0xff]  ;;  %v547_v42 = vpack.c.bf16 %v88_v36, %v87_v35 }
  0x53   :  { %563 = vmatpush3.bf16.msra.mxu1 %v562_v32  ;;  %v549_v43 = vpack.c.bf16 %v106_v38, %v105_v37  ;;  %v89_v44 = vld [vmem:[#allocation7 + $0x50] sm:$0xff]  ;;  %v90_v45 = vld [vmem:[#allocation7 + $0x58] sm:$0xff]  ;;  %v107_v46 = vld [vmem:[#allocation7 + $0xe0] sm:$0xff]  ;;  %v568_v48 = vpack.c.bf16 %v198_v41, %v197_v40 }
  0x54   :  { %564 = vmatprep.subr.bf16.mxu1 %v746_v0  ;;  %v108_v47 = vld [vmem:[#allocation7 + $0xe8] sm:$0xff]  ;;  %v199_v49 = vld [vmem:[#allocation8 + $0x30] sm:$0xff]  ;;  %v200_v50 = vld [vmem:[#allocation8 + $0x38] sm:$0xff]  ;;  %v551_v51 = vpack.c.bf16 %v90_v45, %v89_v44 }
  0x55   :  { %540 = vmatpush3.bf16.msra.mxu0 %v539_v20  ;;  %v553_v52 = vpack.c.bf16 %v108_v47, %v107_v46  ;;  %v91_v53 = vld [vmem:[#allocation7 + $0x60] sm:$0xff]  ;;  %v92_v54 = vld [vmem:[#allocation7 + $0x68] sm:$0xff]  ;;  %v109_v55 = vld [vmem:[#allocation7 + $0xf0] sm:$0xff]  ;;  %v571_v57 = vpack.c.bf16 %v200_v50, %v199_v49 }
  0x56   :  { %542 = vmatprep.subr.bf16.mxu0 %v541_v21  ;;  %v110_v56 = vld [vmem:[#allocation7 + $0xf8] sm:$0xff]  ;;  %v201_v58 = vld [vmem:[#allocation8 + $0x40] sm:$0xff]  ;;  %v202_v59 = vld [vmem:[#allocation8 + $0x48] sm:$0xff]  ;;  %v555_v60 = vpack.c.bf16 %v92_v54, %v91_v53 }
  0x57   :  { %566 = vmatpush3.bf16.msra.mxu1 %v565_v39  ;;  %v557_v61 = vpack.c.bf16 %v110_v56, %v109_v55  ;;  %v93_v62 = vld [vmem:[#allocation7 + $0x70] sm:$0xff]  ;;  %v94_v63 = vld [vmem:[#allocation7 + $0x78] sm:$0xff]  ;;  %v574_v1 = vpack.c.bf16 %v202_v59, %v201_v58  ;;  %v205_v6 = vld [vmem:[#allocation8 + $0x60] sm:$0xff] }
  0x58   :  { %567 = vmatprep.subr.bf16.mxu1 %v746_v0  ;;  %v203_v2 = vld [vmem:[#allocation8 + $0x50] sm:$0xff]  ;;  %v204_v3 = vld [vmem:[#allocation8 + $0x58] sm:$0xff]  ;;  %v559_v4 = vpack.c.bf16 %v94_v63, %v93_v62  ;;  %v206_v7 = vld [vmem:[#allocation8 + $0x68] sm:$0xff] }
  0x59   :  { %544 = vmatpush3.bf16.msra.mxu0 %v543_v31  ;;  %v577_v5 = vpack.c.bf16 %v204_v3, %v203_v2  ;;  %v580_v8 = vpack.c.bf16 %v206_v7, %v205_v6  ;;  %v207_v9 = vld [vmem:[#allocation8 + $0x70] sm:$0xff]  ;;  %v208_v10 = vld [vmem:[#allocation8 + $0x78] sm:$0xff] }
  0x5a   :  { %546 = vmatprep.subr.bf16.mxu0 %v545_v34  ;;  %v583_v11 = vpack.c.bf16 %v208_v10, %v207_v9  ;;  %v387_v14 = vld [vmem:[%s883_s3] ss:$0 sm:$0xff]  ;;  %v191_v17 = vld [vmem:[#allocation5] sm:$0xf] }
  0x5b   :  { %569 = vmatpush3.bf16.msra.mxu1 %v568_v48  ;;  %v388_v27 = vld [vmem:[%s884_s4] ss:$0 sm:$0xff] }
  0x5c   :  { %570 = vmatprep.subr.bf16.mxu1 %v746_v0  ;;  %v389_v29 = vld [vmem:[%s885_s5] ss:$0 sm:$0xff] }
  0x5d   :  { %548 = vmatpush3.bf16.msra.mxu0 %v547_v42 }
  0x5e   :  { %550 = vmatprep.subr.bf16.mxu0 %v549_v43 }
  0x5f   :  { %572 = vmatpush3.bf16.msra.mxu1 %v571_v57 }
  0x60   :  { %573 = vmatprep.subr.bf16.mxu1 %v746_v0 }
  0x61   :  { %552 = vmatpush3.bf16.msra.mxu0 %v551_v51 }
  0x62   :  { %554 = vmatprep.subr.bf16.mxu0 %v553_v52 }
  0x63   :  { %575 = vmatpush3.bf16.msra.mxu1 %v574_v1 }
  0x64   :  { %576 = vmatprep.subr.bf16.mxu1 %v746_v0 }
  0x65   :  { %556 = vmatpush3.bf16.msra.mxu0 %v555_v60 }
  0x66   :  { %558 = vmatprep.subr.bf16.mxu0 %v557_v61 }
  0x67   :  { %578 = vmatpush3.bf16.msra.mxu1 %v577_v5 }
  0x68   :  { %579 = vmatprep.subr.bf16.mxu1 %v746_v0 }
  0x69   :  { %560 = vmatpush3.bf16.msra.mxu0 %v559_v4 }
  0x6a   :  { %585 = vmatprep.subr.bf16.mxu0 %v746_v0 }
  0x6b   :  { %581 = vmatpush3.bf16.msra.mxu1 %v580_v8 }
  0x6c   :  { %186 = vmatmul.mubr.f32.vlgmr.msra.gmra.mrb[0].mxu0 %v839_v26  ;;  %582 = vmatprep.subr.bf16.mxu1 %v746_v0 }
  0x6d   :  { %587 = vmatpush3.bf16.msra.mxu0 %v562_v32  ;;  %526 = vmatprep.mubr.msk.f32.mxu0 %vm747_vm0, %v748_v12 }
  0x6e   :  { %588 = vmatprep.subr.bf16.mxu0 %v746_v0 }
  0x6f   :  { %584 = vmatpush3.bf16.msra.mxu1 %v583_v11 }
  0x71   :  { %590 = vmatpush3.bf16.msra.mxu0 %v565_v39 }
  0x72   :  { %591 = vmatprep.subr.bf16.mxu0 %v746_v0 }
  0x75   :  { %593 = vmatpush3.bf16.msra.mxu0 %v568_v48 }
  0x76   :  { %594 = vmatprep.subr.bf16.mxu0 %v746_v0 }
  0x79   :  { %596 = vmatpush3.bf16.msra.mxu0 %v571_v57 }
  0x7a   :  { %597 = vmatprep.subr.bf16.mxu0 %v746_v0 }
  0x7d   :  { %599 = vmatpush3.bf16.msra.mxu0 %v574_v1 }
  0x7e   :  { %600 = vmatprep.subr.bf16.mxu0 %v746_v0 }
  0x81   :  { %602 = vmatpush3.bf16.msra.mxu0 %v577_v5 }
  0x82   :  { %603 = vmatprep.subr.bf16.mxu0 %v746_v0 }
  0x85   :  { %605 = vmatpush3.bf16.msra.mxu0 %v580_v8 }
  0x86   :  { %606 = vmatprep.subr.bf16.mxu0 %v746_v0 }
  0x89   :  { %608 = vmatpush3.bf16.msra.mxu0 %v583_v11 }
 0x13f   :  { %v422_v13 = vpop.f32.mrb[0].mxu0 }
 0x140   :  { %v423_v15 = vpop.f32.mrb[1].mxu0 }
 0x141   :  { %v424_v16 = vadd.f32 %v423_v15, %v422_v13 }
 0x143   :  { %v188_v18 = vadd.f32 %v424_v16, %v387_v14 }
 0x145   :  { %v192_v19 = vadd.f32 %v191_v17, %v188_v18 }
 0x147   :  { %492 = vmatmul.mubr.f32.vlgmr.msra.gmra.mrb[0].mxu1 %v192_v19 }
 0x21a   :  { %v275_v20 = vpop.f32.mrb[0].mxu1 }
 0x21b   :  { %v279_v0 = vsub.f32 %v192_v19, %v275_v20  ;;  %v493_v21 = vpop.f32.mrb[1].mxu1 }
 0x21d   :  { %v280_v22 = vmul.f32 %v279_v0, %v279_v0 }
 0x21f   :  { %527 = vmatmul.mubr.f32.vlgmr.msra.gmra.mrb[2].mxu0 %v280_v22 }
 0x2f2   :  { %v347_v23 = vpop.f32.mrb[2].mxu0 }
 0x2f3   :  { %v348_v24 = vadd.f32 1e-12, %v347_v23  ;;  %v528_v25 = vpop.f32.mrb[3].mxu0 }
 0x2f5   :  { %620 = vrsqrt.f32 %v348_v24 }
 0x2ff   :  { %v621_v26 = vpop.eup %620 }
 0x300   :  { %v352_v28 = vmul.f32 %v621_v26, %v279_v0 }
 0x302   :  { %v360_v30 = vmul.f32 %v388_v27, %v352_v28 }
 0x304   :  { %v368_v31 = vadd.f32 %v389_v29, %v360_v30 }
 0x306   :  { %369 = vst [vmem:[#allocation10] sm:$0xf] %v368_v31 }
 0x307   :  { %721 = shalt.err (!%p718_p8)
}
 0x308   :  { %s722_s10 = scalar_lea.hbm %s887_s7, 64 }
 0x309   :  { %p723_p9 = scmp.ne.s32.totalorder %s887_s7, %s722_s10  ;;  %p726_p10 = scmp.lt.u32.totalorder %s722_s10, %s887_s7 }
 0x30b   :  { %p728_p11 = pnand %p726_p10, %p723_p9 }
 0x30d   :  { %731 = shalt.err (!%p728_p11)
}
 0x30e   :  { %379 = dma.vmem_to_hbm [thread:$0]  %s377_s30, 64, %s887_s7, [#allocation4]  }
 0x30f   :  { %738 = dma.done.wait [#allocation4], 64  }
 0x310   :  { %739 = vsyncadd [#allocation4], 4294967232 }
 0x311   :  { %383 = vsyncpa [#allocation3], 1 }
 0x312   :  { %384 = vsyncpa [#allocation6], 1 }
 0x313   :  { %385 = vsyncpa [#allocation9], 1 }
 0x314   :  { %386 = vsyncpa [#allocation4], 1 }

</bundles_post_ra>
